<compile_context>
chip_gen: v7x
topology: tpu7x:2x2x1
jax: 0.10.0
libtpu: 0.0.40
codegen_flags: <defaults>
</compile_context>

<pallas_src>
import functools

import jax
import jax.numpy as jnp
from jax.experimental import pallas as pl
from jax.experimental.pallas import tpu as pltpu

NEG_SLOPE = 0.01   # PyTorch nn.LeakyReLU default
HIDDEN = 64        # fixed by the module


def _round_up(x, m):
    return (x + m - 1) // m * m


def _cdiv(a, b):
    return (a + b - 1) // b


def _leaky_relu(x):
    return jnp.where(x > 0, x, NEG_SLOPE * x)


def dqn_kernel(x_ref, w1_ref, b1_ref, w2_ref, b2_ref, w3_ref, b3_ref, o_ref):
    # x_ref: (tile_b, states) in the caller's native dtype; cast to the MXU compute
    # dtype here (free VPU work) instead of a separate HBM convert pass outside.
    # All matmuls accumulate in f32 on the MXU; bias-add + LeakyReLU stay f32 on
    # the VPU (v5e VPU has no bf16).
    x = x_ref[...].astype(w1_ref.dtype)

    # fc1 + LeakyReLU
    h = jnp.dot(x, w1_ref[...], preferred_element_type=jnp.float32) + b1_ref[...]
    h = _leaky_relu(h)

    # fc2 + LeakyReLU
    h = jnp.dot(h.astype(w2_ref.dtype), w2_ref[...],
                preferred_element_type=jnp.float32) + b2_ref[...]
    h = _leaky_relu(h)

    # fc3 (no activation); output columns padded only to the minimum legal width.
    out = jnp.dot(h.astype(w3_ref.dtype), w3_ref[...],
                  preferred_element_type=jnp.float32) + b3_ref[...]
    o_ref[...] = out.astype(o_ref.dtype)


@functools.partial(
    jax.jit,
    static_argnames=("states", "outputs", "tile_b", "compute_dtype", "out_dtype"))
def dqn_forward(x, params, *, states, outputs, tile_b=8192,
                compute_dtype=jnp.bfloat16, out_dtype=jnp.float32):
    """DQN forward pass. x may be any shape whose elements flatten to rows of
    `states` features (mirrors x.view(-1, states))."""
    w1, b1, w2, b2, w3, b3 = params

    assert x.size % states == 0, (
        f"input of {x.size} elements does not flatten to rows of {states} features")
    x2d = x.reshape(-1, states)           # native dtype; cast happens in-kernel
    batch = x2d.shape[0]

    x_itemsize = jnp.dtype(x2d.dtype).itemsize
    c_itemsize = jnp.dtype(compute_dtype).itemsize
    o_itemsize = jnp.dtype(out_dtype).itemsize

    # ----- minimal lane padding of the output (last dim = full array dim) --------
    out_pad = _round_up(max(outputs, 1), 8)
    if out_pad != w3.shape[1]:
        w3 = jnp.pad(w3, ((0, 0), (0, out_pad - w3.shape[1])))
        b3 = jnp.pad(b3, ((0, out_pad - b3.shape[0]),))

    # ----- VMEM-footprint-aware batch-tile cap (same kernel fits v5e/v6e/v7x) ----
    VMEM_TILE_BUDGET = 20 * 1024 * 1024   # conservative vs v7x 64 MiB physical
    per_row_bytes = (states * x_itemsize * 2        # x tile, double-buffered
                     + out_pad * o_itemsize * 2     # out tile, double-buffered
                     + HIDDEN * 4 * 4)              # f32 hidden temps + cast headroom
    fixed_bytes = ((states * HIDDEN + HIDDEN * HIDDEN + HIDDEN * out_pad) * c_itemsize
                   + (2 * HIDDEN + out_pad) * 4)    # resident weights + f32 biases
    max_tile = max(((VMEM_TILE_BUDGET - fixed_bytes) // per_row_bytes) // 8 * 8, 8)
    tile_cap = min(_round_up(max(int(tile_b), 8), 8), max_tile)

    # ----- batch tiling: minimize padding, keep >=2 (even) steps for v7x ---------
    steps = _cdiv(batch, tile_cap)
    if steps == 1 and batch > 8:
        steps = 2                         # keep both v7x TensorCores busy
    elif steps > 2 and steps % 2 == 1:
        steps += 1                        # even step count -> balanced megacore split
    tile = _round_up(_cdiv(batch, steps), 8)
    padded_batch = steps * tile
    if padded_batch != batch:
        x2d = jnp.pad(x2d, ((0, padded_batch - batch), (0, 0)))
    grid = (steps,)

    # ----- dtype prep: bf16 weights for the MXU, f32 biases ----------------------
    w1c = w1.astype(compute_dtype)
    w2c = w2.astype(compute_dtype)
    w3c = w3.astype(compute_dtype)
    b1_2d = b1.reshape(1, -1).astype(jnp.float32)
    b2_2d = b2.reshape(1, -1).astype(jnp.float32)
    b3_2d = b3.reshape(1, -1).astype(jnp.float32)

    tiled = lambda shape: pl.BlockSpec(shape, lambda i: (i, 0))       # batch-tiled
    resident = lambda shape: pl.BlockSpec(shape, lambda i: (0, 0))    # weights/biases

    # ----- scoped-VMEM limit derived from the actual tile footprint --------------
    est_vmem = fixed_bytes + tile * per_row_bytes
    vmem_limit = int(min(max(2 * est_vmem, 32 * 1024 * 1024), 48 * 1024 * 1024))

    # ----- cost estimate reflecting the slimmed, native-dtype traffic ------------
    flops = 2 * padded_batch * (states * HIDDEN + HIDDEN * HIDDEN + HIDDEN * out_pad)
    bytes_accessed = (padded_batch * states * x_itemsize          # x in (native dtype)
                      + padded_batch * out_pad * o_itemsize       # out writeback
                      + (states * HIDDEN + HIDDEN * HIDDEN
                         + HIDDEN * out_pad) * c_itemsize         # weights
                      + (2 * HIDDEN + out_pad) * 4)               # biases
    cost = pl.CostEstimate(flops=flops, transcendentals=0,
                           bytes_accessed=bytes_accessed)

    out_padded = pl.pallas_call(
        dqn_kernel,
        out_shape=jax.ShapeDtypeStruct((padded_batch, out_pad), out_dtype),
        grid=grid,
        in_specs=[
            tiled((tile, states)),
            resident(w1c.shape),
            resident(b1_2d.shape),
            resident(w2c.shape),
            resident(b2_2d.shape),
            resident(w3c.shape),
            resident(b3_2d.shape),
        ],
        out_specs=tiled((tile, out_pad)),
        compiler_params=pltpu.CompilerParams(
            dimension_semantics=("parallel",),      # shard batch across v7x's 2 TCs
            vmem_limit_bytes=vmem_limit,
        ),
        cost_estimate=cost,
    )(x2d, w1c, b1_2d, w2c, b2_2d, w3c, b3_2d)

    # Strip batch padding and the (small) lane-padding columns.
    return out_padded[:batch, :outputs]


def init_params(key, states, outputs, hidden=HIDDEN):
    """Deterministic synthetic parameters (Kaiming-uniform-ish), stored as
    (in_features, out_features)."""
    ks = jax.random.split(key, 6)

    def lin(kw, kb, fan_in, fan_out):
        bound = 1.0 / jnp.sqrt(fan_in)
        w = jax.random.uniform(kw, (fan_in, fan_out), jnp.float32, -bound, bound)
        b = jax.random.uniform(kb, (fan_out,), jnp.float32, -bound, bound)
        return w, b

    w1, b1 = lin(ks[0], ks[1], states, hidden)
    w2, b2 = lin(ks[2], ks[3], hidden, hidden)
    w3, b3 = lin(ks[4], ks[5], hidden, outputs)
    return (w1, b1, w2, b2, w3, b3)


def dqn_reference(x, params, *, states):
    """Plain-JAX f32 reference matching the PyTorch module."""
    w1, b1, w2, b2, w3, b3 = params
    h = x.reshape(-1, states)
    h = jax.nn.leaky_relu(h @ w1 + b1, NEG_SLOPE)
    h = jax.nn.leaky_relu(h @ w2 + b2, NEG_SLOPE)
    return h @ w3 + b3


if __name__ == "__main__":
    STATES = 32
    OUTPUTS = 4
    BATCH = 8

    key = jax.random.PRNGKey(0)
    k_params, k_x, k_x2 = jax.random.split(key, 3)

    params = init_params(k_params, STATES, OUTPUTS)
    x = jax.random.normal(k_x, (BATCH, STATES), jnp.float32)

    ref = dqn_reference(x, params, states=STATES)

    # Exactness check: f32 compute path must match the reference tightly.
    out_f32 = dqn_forward(x, params, states=STATES, outputs=OUTPUTS,
                          compute_dtype=jnp.float32)
    out_f32 = jax.block_until_ready(out_f32)
    assert out_f32.shape == (BATCH, OUTPUTS), out_f32.shape
    assert jnp.allclose(out_f32, ref, atol=1e-5, rtol=1e-5), "f32 mismatch vs reference"

    # Production path: bf16 MXU operands, f32 accumulation, f32 output.
    out_bf16 = dqn_forward(x, params, states=STATES, outputs=OUTPUTS)
    out_bf16 = jax.block_until_ready(out_bf16)
    assert out_bf16.shape == (BATCH, OUTPUTS), out_bf16.shape
    assert jnp.allclose(out_bf16, ref, atol=1e-1, rtol=1e-1), "bf16 mismatch vs reference"

    # Ragged / multi-dim input: exercises x.view(-1, states) and batch-pad stripping.
    x_ragged = jax.random.normal(k_x2, (2, 5, STATES), jnp.float32)   # 10 rows
    ref_r = dqn_reference(x_ragged, params, states=STATES)
    out_r = dqn_forward(x_ragged, params, states=STATES, outputs=OUTPUTS)
    out_r = jax.block_until_ready(out_r)
    assert out_r.shape == (10, OUTPUTS), out_r.shape
    assert jnp.allclose(out_r, ref_r, atol=1e-1, rtol=1e-1), "ragged mismatch vs reference"

    print("KERNEL_OK")
</pallas_src>

<mosaic_0001>
module attributes {stable_mosaic.version = 11 : i64} {
  func.func @dqn_kernel(%arg0: i32, %arg1: memref<8x32xf32, #tpu.memory_space<vmem>>, %arg2: memref<32x64xf32, #tpu.memory_space<vmem>>, %arg3: memref<1x64xf32, #tpu.memory_space<vmem>>, %arg4: memref<64x64xf32, #tpu.memory_space<vmem>>, %arg5: memref<1x64xf32, #tpu.memory_space<vmem>>, %arg6: memref<64x8xf32, #tpu.memory_space<vmem>>, %arg7: memref<1x8xf32, #tpu.memory_space<vmem>>, %arg8: memref<8x8xf32, #tpu.memory_space<vmem>>) attributes {dimension_semantics = [#tpu.dimension_semantics<parallel>], iteration_bounds = array<i64: 1>, scalar_prefetch = 0 : i64, scratch_operands = 0 : i64, tpu.core_type = #tpu.core_type<tc>, window_params = [{transform_indices = @transform_0, window_bounds = array<i64: 8, 32>}, {pipeline_mode = #tpu.pipeline_mode<synchronous>, transform_indices = @transform_1, window_bounds = array<i64: 32, 64>}, {pipeline_mode = #tpu.pipeline_mode<synchronous>, transform_indices = @transform_2, window_bounds = array<i64: 1, 64>}, {pipeline_mode = #tpu.pipeline_mode<synchronous>, transform_indices = @transform_3, window_bounds = array<i64: 64, 64>}, {pipeline_mode = #tpu.pipeline_mode<synchronous>, transform_indices = @transform_4, window_bounds = array<i64: 1, 64>}, {pipeline_mode = #tpu.pipeline_mode<synchronous>, transform_indices = @transform_5, window_bounds = array<i64: 64, 8>}, {pipeline_mode = #tpu.pipeline_mode<synchronous>, transform_indices = @transform_6, window_bounds = array<i64: 1, 8>}, {transform_indices = @transform_7, window_bounds = array<i64: 8, 8>}]} {
    %c0 = arith.constant 0 : index
    %c0_0 = arith.constant 0 : index
    %0 = vector.load %arg1[%c0, %c0_0] : memref<8x32xf32, #tpu.memory_space<vmem>>, vector<8x32xf32>
    %c0_1 = arith.constant 0 : index
    %c0_2 = arith.constant 0 : index
    %1 = vector.load %arg2[%c0_1, %c0_2] : memref<32x64xf32, #tpu.memory_space<vmem>>, vector<32x64xf32>
    %cst = arith.constant dense<0.000000e+00> : vector<8x64xf32>
    %2 = tpu.matmul %0, %1, %cst {dimension_numbers = #tpu.dot_dimension_numbers<[1], [0], [0], [1], [0, 0, 1, 1], [], []>} : vector<8x32xf32>, vector<32x64xf32>, vector<8x64xf32> -> vector<8x64xf32>
    %c0_3 = arith.constant 0 : index
    %c0_4 = arith.constant 0 : index
    %3 = vector.load %arg3[%c0_3, %c0_4] : memref<1x64xf32, #tpu.memory_space<vmem>>, vector<1x64xf32>
    %4 = vector.broadcast %3 : vector<1x64xf32> to vector<8x64xf32>
    %5 = arith.addf %2, %4 : vector<8x64xf32>
    %cst_5 = arith.constant 0.000000e+00 : f32
    %6 = vector.broadcast %cst_5 : f32 to vector<8x64xf32>
    %7 = arith.cmpf ogt, %5, %6 : vector<8x64xf32>
    %cst_6 = arith.constant 0.00999999977 : f32
    %8 = vector.broadcast %cst_6 : f32 to vector<8x64xf32>
    %9 = arith.mulf %8, %5 : vector<8x64xf32>
    %10 = arith.select %7, %5, %9 : vector<8x64xi1>, vector<8x64xf32>
    %c0_7 = arith.constant 0 : index
    %c0_8 = arith.constant 0 : index
    %11 = vector.load %arg4[%c0_7, %c0_8] : memref<64x64xf32, #tpu.memory_space<vmem>>, vector<64x64xf32>
    %cst_9 = arith.constant dense<0.000000e+00> : vector<8x64xf32>
    %12 = tpu.matmul %10, %11, %cst_9 {dimension_numbers = #tpu.dot_dimension_numbers<[1], [0], [0], [1], [0, 0, 1, 1], [], []>} : vector<8x64xf32>, vector<64x64xf32>, vector<8x64xf32> -> vector<8x64xf32>
    %c0_10 = arith.constant 0 : index
    %c0_11 = arith.constant 0 : index
    %13 = vector.load %arg5[%c0_10, %c0_11] : memref<1x64xf32, #tpu.memory_space<vmem>>, vector<1x64xf32>
    %14 = vector.broadcast %13 : vector<1x64xf32> to vector<8x64xf32>
    %15 = arith.addf %12, %14 : vector<8x64xf32>
    %cst_12 = arith.constant 0.000000e+00 : f32
    %16 = vector.broadcast %cst_12 : f32 to vector<8x64xf32>
    %17 = arith.cmpf ogt, %15, %16 : vector<8x64xf32>
    %cst_13 = arith.constant 0.00999999977 : f32
    %18 = vector.broadcast %cst_13 : f32 to vector<8x64xf32>
    %19 = arith.mulf %18, %15 : vector<8x64xf32>
    %20 = arith.select %17, %15, %19 : vector<8x64xi1>, vector<8x64xf32>
    %c0_14 = arith.constant 0 : index
    %c0_15 = arith.constant 0 : index
    %21 = vector.load %arg6[%c0_14, %c0_15] : memref<64x8xf32, #tpu.memory_space<vmem>>, vector<64x8xf32>
    %cst_16 = arith.constant dense<0.000000e+00> : vector<8x8xf32>
    %22 = tpu.matmul %20, %21, %cst_16 {dimension_numbers = #tpu.dot_dimension_numbers<[1], [0], [0], [1], [0, 0, 1, 1], [], []>} : vector<8x64xf32>, vector<64x8xf32>, vector<8x8xf32> -> vector<8x8xf32>
    %c0_17 = arith.constant 0 : index
    %c0_18 = arith.constant 0 : index
    %23 = vector.load %arg7[%c0_17, %c0_18] : memref<1x8xf32, #tpu.memory_space<vmem>>, vector<1x8xf32>
    %24 = vector.broadcast %23 : vector<1x8xf32> to vector<8x8xf32>
    %25 = arith.addf %22, %24 : vector<8x8xf32>
    %c0_19 = arith.constant 0 : index
    %c0_20 = arith.constant 0 : index
    %26 = vector.load %arg8[%c0_19, %c0_20] : memref<8x8xf32, #tpu.memory_space<vmem>>, vector<8x8xf32>
    tpu.vector_store %arg8[%c0_19, %c0_20], %25 {strides = array<i32>} : memref<8x8xf32, #tpu.memory_space<vmem>>, vector<8x8xf32>,
    return
  }
  func.func @transform_0(%arg0: i32) -> (i32, i32) {
    %c0_i32 = arith.constant 0 : i32
    %c0_i32_0 = arith.constant 0 : i32
    return %arg0, %c0_i32 : i32, i32
  }
  func.func @transform_1(%arg0: i32) -> (i32, i32) {
    %c0_i32 = arith.constant 0 : i32
    %c0_i32_0 = arith.constant 0 : i32
    %c0_i32_1 = arith.constant 0 : i32
    return %c0_i32, %c0_i32_0 : i32, i32
  }
  func.func @transform_2(%arg0: i32) -> (i32, i32) {
    %c0_i32 = arith.constant 0 : i32
    %c0_i32_0 = arith.constant 0 : i32
    %c0_i32_1 = arith.constant 0 : i32
    return %c0_i32, %c0_i32_0 : i32, i32
  }
  func.func @transform_3(%arg0: i32) -> (i32, i32) {
    %c0_i32 = arith.constant 0 : i32
    %c0_i32_0 = arith.constant 0 : i32
    %c0_i32_1 = arith.constant 0 : i32
    return %c0_i32, %c0_i32_0 : i32, i32
  }
  func.func @transform_4(%arg0: i32) -> (i32, i32) {
    %c0_i32 = arith.constant 0 : i32
    %c0_i32_0 = arith.constant 0 : i32
    %c0_i32_1 = arith.constant 0 : i32
    return %c0_i32, %c0_i32_0 : i32, i32
  }
  func.func @transform_5(%arg0: i32) -> (i32, i32) {
    %c0_i32 = arith.constant 0 : i32
    %c0_i32_0 = arith.constant 0 : i32
    %c0_i32_1 = arith.constant 0 : i32
    return %c0_i32, %c0_i32_0 : i32, i32
  }
  func.func @transform_6(%arg0: i32) -> (i32, i32) {
    %c0_i32 = arith.constant 0 : i32
    %c0_i32_0 = arith.constant 0 : i32
    %c0_i32_1 = arith.constant 0 : i32
    return %c0_i32, %c0_i32_0 : i32, i32
  }
  func.func @transform_7(%arg0: i32) -> (i32, i32) {
    %c0_i32 = arith.constant 0 : i32
    %c0_i32_0 = arith.constant 0 : i32
    return %arg0, %c0_i32 : i32, i32
  }
}

</mosaic_0001>

<bundles_post_ra>
// kernel: dqn_forward.1
= control target key start
LH: loop header
LB: loop body
LE: loop exit
PB: predicated region body
PF: predicated region fallthrough
CT: control target
= control target key end

     0   :  { %v412_v0 = vmov 0.0|0.0   ;;  %vm413_vm0 = vmmov 0   ;;  %v414_v4 = vmov 0.0   ;;  %vm38_vm1 = vcmask 261120   ;;  %s533_s1 = inlined_call_operand.vmem [shape: f32[32,64], index: 1, kind: input, shape index: {}]   ;;  %s534_s3 = inlined_call_operand.vmem [shape: f32[64,64], index: 3, kind: input, shape index: {}]   ;;  %s535_s0 = inlined_call_operand.vmem [shape: f32[8,32], index: 0, kind: input, shape index: {}]   ;;  %s536_s5 = inlined_call_operand.vmem [shape: f32[64,8], index: 5, kind: input, shape index: {}]   ;;  %s537_s2 = inlined_call_operand.vmem [shape: f32[1,64], index: 2, kind: input, shape index: {}]   ;;  %s538_s4 = inlined_call_operand.vmem [shape: f32[1,64], index: 4, kind: input, shape index: {}]   ;;  %s539_s6 = inlined_call_operand.vmem [shape: f32[1,8], index: 6, kind: input, shape index: {}]   ;;  %s540_s7 = inlined_call_operand.vmem [shape: f32[8,8], index: 7, kind: output, shape index: {}]  }
   0x1   :  { %379 = vmatprep.subr.bf16.mxu0 %v412_v0  ;;  %v27_v1 = vld [vmem:[%s533_s1] sm:$0xff]  ;;  %v28_v2 = vld [vmem:[%s533_s1 + $0x8] sm:$0xff]  ;;  %v29_v3 = vld [vmem:[%s533_s1 + $0x10] sm:$0xff]  ;;  %338 = vmatprep.mubr.msk.f32.mxu0 %vm413_vm0, %v414_v4  ;;  %vm130_vm3 = vcmask 523264   ;;  %vm295_vm5 = vcmask 64512  }
   0x2   :  { %v380_v5 = vpack.c.bf16 %v28_v2, %v27_v1  ;;  %v30_v6 = vld [vmem:[%s533_s1 + $0x18] sm:$0xff]  ;;  %385 = vmatprep.subr.bf16.mxu1 %v412_v0  ;;  %v115_v7 = vld [vmem:[%s534_s3] sm:$0xff]  ;;  %357 = vmatprep.mubr.msk.f32.mxu1 %vm413_vm0, %v414_v4  ;;  %v116_v8 = vld [vmem:[%s534_s3 + $0x8] sm:$0xff] }
   0x3   :  { %v117_v9 = vld [vmem:[%s534_s3 + $0x10] sm:$0xff]  ;;  %v118_v10 = vld [vmem:[%s534_s3 + $0x18] sm:$0xff]  ;;  %v383_v11 = vpack.c.bf16 %v30_v6, %v29_v3  ;;  %v386_v12 = vpack.c.bf16 %v116_v8, %v115_v7  ;;  %v119_v14 = vld [vmem:[%s534_s3 + $0x20] sm:$0xff] }
   0x4   :  { %381 = vmatpush3.bf16.msra.mxu0 %v380_v5  ;;  %v389_v13 = vpack.c.bf16 %v118_v10, %v117_v9  ;;  %v120_v15 = vld [vmem:[%s534_s3 + $0x28] sm:$0xff]  ;;  %v26_v16 = vld [vmem:[%s535_s0] sm:$0xff]  ;;  %v121_v18 = vld [vmem:[%s534_s3 + $0x30] sm:$0xff] }
   0x5   :  { %382 = vmatprep.subr.bf16.mxu0 %v412_v0  ;;  %387 = vmatpush3.bf16.msra.mxu1 %v386_v12  ;;  %v392_v17 = vpack.c.bf16 %v120_v15, %v119_v14  ;;  %v122_v19 = vld [vmem:[%s534_s3 + $0x38] sm:$0xff]  ;;  %v207_v21 = vld [vmem:[%s536_s5] sm:$0xff]  ;;  %v208_v22 = vld [vmem:[%s536_s5 + $0x8] sm:$0xff] }
   0x6   :  { %388 = vmatprep.subr.bf16.mxu1 %v412_v0  ;;  %v395_v20 = vpack.c.bf16 %v122_v19, %v121_v18  ;;  %v209_v23 = vld [vmem:[%s536_s5 + $0x10] sm:$0xff]  ;;  %v398_v24 = vpack.c.bf16 %v208_v22, %v207_v21  ;;  %v210_v25 = vld [vmem:[%s536_s5 + $0x18] sm:$0xff]  ;;  %v211_v27 = vld [vmem:[%s536_s5 + $0x20] sm:$0xff] }
   0x7   :  { %v401_v26 = vpack.c.bf16 %v210_v25, %v209_v23  ;;  %v212_v28 = vld [vmem:[%s536_s5 + $0x28] sm:$0xff]  ;;  %v301_v30 = vld [vmem:[%s537_s2] ss:$0 sm:$0xff]  ;;  %v213_v36 = vld [vmem:[%s536_s5 + $0x30] sm:$0xff] }
   0x8   :  { %384 = vmatpush3.bf16.msra.mxu0 %v383_v11  ;;  %v404_v29 = vpack.c.bf16 %v212_v28, %v211_v27  ;;  %v214_v37 = vld [vmem:[%s536_s5 + $0x38] sm:$0xff]  ;;  %v303_v39 = vld [vmem:[%s538_s4] ss:$0 sm:$0xff] }
   0x9   :  { %397 = vmatprep.subr.bf16.mxu0 %v412_v0  ;;  %390 = vmatpush3.bf16.msra.mxu1 %v389_v13  ;;  %v407_v38 = vpack.c.bf16 %v214_v37, %v213_v36  ;;  %v305_v45 = vld [vmem:[%s539_s6] ss:$0 sm:$0xff] }
   0xa   :  { %391 = vmatprep.subr.bf16.mxu1 %v412_v0 }
   0xb   :  { %339 = vmatmul.mubr.msk.f32.vlgmr.msra.gmra.mrb[0].mxu0 %vm38_vm1, %v26_v16 }
   0xc   :  { %376 = vmatprep.mubr.msk.f32.mxu0 %vm413_vm0, %v414_v4  ;;  %399 = vmatpush3.bf16.msra.mxu0 %v398_v24 }
   0xd   :  { %393 = vmatpush3.bf16.msra.mxu1 %v392_v17  ;;  %400 = vmatprep.subr.bf16.mxu0 %v412_v0 }
   0xe   :  { %394 = vmatprep.subr.bf16.mxu1 %v412_v0 }
  0x10   :  { %402 = vmatpush3.bf16.msra.mxu0 %v401_v26 }
  0x11   :  { %396 = vmatpush3.bf16.msra.mxu1 %v395_v20  ;;  %403 = vmatprep.subr.bf16.mxu0 %v412_v0 }
  0x14   :  { %405 = vmatpush3.bf16.msra.mxu0 %v404_v29 }
  0x15   :  { %406 = vmatprep.subr.bf16.mxu0 %v412_v0 }
  0x18   :  { %408 = vmatpush3.bf16.msra.mxu0 %v407_v38 }
  0xde   :  { %v108_v31 = vpop.f32.mrb[0].mxu0 }
  0xdf   :  { %v109_v32 = vadd.f32 %v301_v30, %v108_v31  ;;  %v340_v33 = vpop.f32.mrb[1].mxu0 }
  0xe1   :  { %vm112_vm2 = vcmp.gt.f32.partialorder %v109_v32, 0.0  ;;  %v113_v34 = vmul.f32 0.01, %v109_v32 }
  0xe3   :  { %v114_v35 = vsel %vm112_vm2, %v109_v32, %v113_v34 }
  0xe4   :  { %358 = vmatmul.mubr.msk.f32.vlgmr.msra.gmra.mrb[0].mxu1 %vm130_vm3, %v114_v35 }
 0x1b7   :  { %v200_v40 = vpop.f32.mrb[0].mxu1 }
 0x1b8   :  { %v201_v41 = vadd.f32 %v303_v39, %v200_v40  ;;  %v359_v42 = vpop.f32.mrb[1].mxu1 }
 0x1ba   :  { %vm204_vm4 = vcmp.gt.f32.partialorder %v201_v41, 0.0  ;;  %v205_v43 = vmul.f32 0.01, %v201_v41 }
 0x1bc   :  { %v206_v44 = vsel %vm204_vm4, %v201_v41, %v205_v43 }
 0x1bd   :  { %377 = vmatmul.mubr.msk.f32.vlgmr.msra.gmra.mrb[2].mxu0 %vm130_vm3, %v206_v44 }
 0x290   :  { %v291_v46 = vpop.f32.mrb[2].mxu0 }
 0x291   :  { %v292_v47 = vadd.f32 %v305_v45, %v291_v46  ;;  %v378_v48 = vpop.f32.mrb[3].mxu0 }
 0x293   :  { %296 = vst.msk [vmem:[%s540_s7] sm:$0xff] %vm295_vm5, %v292_v47 }

</bundles_post_ra>
